<compile_context>
chip_gen: v7x
topology: tpu7x:2x2x1
jax: 0.10.0
libtpu: 0.0.40
codegen_flags: <defaults>
</compile_context>

<pallas_src>
import functools

import jax
import jax.numpy as jnp
from jax.experimental import pallas as pl
from jax.experimental.pallas import tpu as pltpu

_PAIRWISE_EPS = 1e-6   # torch.nn.functional.pairwise_distance default eps
_LABEL_LANES = 128     # a (tb, 1) block is physically (tb, 128) in VMEM


def _round_up(x, m):
    return ((x + m - 1) // m) * m


def _vmem_budgets():
    """Returns (input double-buffer budget, vmem_limit cap), generation aware."""
    try:
        vmem_cap = int(pltpu.get_tpu_info().vmem_capacity_bytes)
    except Exception:
        vmem_cap = 64 << 20                       # assume the smallest (v7x)
    if vmem_cap >= (96 << 20):                    # v5e / v6e: 128 MiB physical
        return 32 << 20, 64 << 20
    return 16 << 20, 40 << 20                     # v7x: 64 MiB physical


def _num_tensorcores():
    """TensorCores per chip (2 on v7x / v4 megacore, 1 on v5e / v6e)."""
    try:
        info = pltpu.get_tpu_info()
        for attr in ("num_cores", "core_count", "num_tensorcores"):
            v = getattr(info, attr, None)
            if isinstance(v, int) and 0 < v <= 4:
                return v
    except Exception:
        pass
    try:
        kind = jax.devices()[0].device_kind.lower()
        if "v7" in kind or "7x" in kind or "v4" in kind:
            return 2
    except Exception:
        pass
    return 1


def _contrastive_loss_kernel(x1_ref, x2_ref, label_ref, out_ref, acc_ref, *,
                             margin, batch):
    c = pl.program_id(0)                   # shard axis ("parallel")
    i = pl.program_id(1)                   # batch-tile axis ("arbitrary")
    n_i = pl.num_programs(1)
    tb = x1_ref.shape[0]

    @pl.when(i == 0)
    def _():
        acc_ref[...] = jnp.zeros_like(acc_ref)

    x1 = x1_ref[...].astype(jnp.float32)            # (tb, D)  f32 math on chip
    x2 = x2_ref[...].astype(jnp.float32)
    lab = label_ref[...].astype(jnp.float32)        # (tb, 1)

    diff = x1 - x2 + _PAIRWISE_EPS                  # pairwise_distance adds eps first
    sq_sum = jnp.sum(diff * diff, axis=1, keepdims=True)   # (tb, 1) == dist^2
    dist = jnp.sqrt(sq_sum)

    per_row = ((1.0 - lab) * sq_sum                                  # similar pairs
               + lab * jnp.square(jnp.maximum(margin - dist, 0.0)))  # dissimilar pairs

    # Logical tile index (NOT the DMA-clamped one).  Interior tiles are always
    # full, so the iota/compare/select mask only runs on the last (possibly
    # partial) tile and on clamped duplicate tiles, which must contribute 0.
    t = c * n_i + i
    needs_mask = (t + 1) * tb > batch

    @pl.when(needs_mask)
    def _():
        row = t * tb + jax.lax.broadcasted_iota(jnp.int32, (tb, 1), 0)
        acc_ref[...] += jnp.where(row < batch, per_row, 0.0)

    @pl.when(jnp.logical_not(needs_mask))
    def _():
        acc_ref[...] += per_row

    # Cross-sublane reduce to the per-shard scalar only once, on the last tile.
    @pl.when(i == n_i - 1)
    def _():
        out_ref[...] = jnp.zeros_like(out_ref) + jnp.sum(acc_ref[...])


def contrastive_loss(output1, output2, label, margin=2.0, *, block_rows=None):
    """output1, output2: (B, D) float (any dtype); label: (B,) 0=similar, 1=dissimilar."""
    B, D = output1.shape
    assert output2.shape == (B, D)
    itemsize = jnp.dtype(output1.dtype).itemsize

    label2d = jnp.asarray(label, jnp.float32).reshape(B, 1)

    sublane_pack = max(8, 32 // max(itemsize, 1))   # f32: 8, bf16: 16, int8/fp8: 32
    d_pad = _round_up(D, 128)                       # lane padding of a (tb, D) block
    dbuf_budget, vmem_limit_cap = _vmem_budgets()

    # ---- Batch tile sized in bytes (~4 MiB per embedding block), clamped by the
    # ---- padding-aware VMEM cost of the buffered blocks + scratch accumulator.
    target_block_bytes = 4 << 20
    tb = max(sublane_pack,
             _round_up(target_block_bytes // max(d_pad * itemsize, 1), sublane_pack))
    if block_rows is not None:
        tb = min(tb, max(sublane_pack, _round_up(block_rows, sublane_pack)))

    per_row_vmem_2buf = 2 * (2 * d_pad * itemsize + _LABEL_LANES * 4) + _LABEL_LANES * 4
    tb_vmem_max = max(sublane_pack,
                      (dbuf_budget // per_row_vmem_2buf) // sublane_pack * sublane_pack)
    tb = min(tb, tb_vmem_max)
    if tb >= B:
        tb = B                      # one full-extent tile (always a legal block shape)
    n_tiles = -(-B // tb)
    # TODO(synk): for very large D on v7x, add a feature-dim grid axis (partial
    # sq_sum accumulation) instead of letting tb floor at one sublane group.

    # ---- Shard the batch tiles across TensorCores only when there is >1 core.
    num_cores = _num_tensorcores()
    num_shards = num_cores if (num_cores > 1 and n_tiles >= num_cores) else 1
    tiles_per_shard = -(-n_tiles // num_shards)

    # ---- Pipeline depth: triple-buffer the streamed inputs when the grid is
    # ---- deep enough and the VMEM budget allows it.
    per_row_vmem_3buf = 3 * (2 * d_pad * itemsize + _LABEL_LANES * 4) + _LABEL_LANES * 4
    nbuf = 3 if (tiles_per_shard >= 3 and tb * per_row_vmem_3buf <= dbuf_budget) else 2
    spec_kwargs = {"pipeline_mode": pl.Buffered(3)} if nbuf == 3 else {}

    def data_map(c, i):
        # Clamp so duplicate trailing tiles (odd n_tiles with >1 shard) never DMA
        # out of bounds; consecutive steps hit the same block index so the
        # refetch is elided, and their rows are masked out inside the kernel.
        return (jnp.minimum(c * tiles_per_shard + i, n_tiles - 1), 0)

    kernel = functools.partial(_contrastive_loss_kernel,
                               margin=float(margin), batch=B)

    # Padding-aware VMEM accounting: a (tb, D) block pads D up to a multiple of
    # 128 lanes; the (tb, 1) label block and accumulator pad to 128 lanes.
    emb_block = tb * d_pad * itemsize
    lab_block = tb * _LABEL_LANES * 4
    vmem_need = nbuf * (2 * emb_block + lab_block) + lab_block + (2 << 20)
    vmem_limit = int(min(max(vmem_need, 32 << 20), vmem_limit_cap))

    cost = pl.CostEstimate(
        flops=4 * B * D + 8 * B,
        transcendentals=B,
        bytes_accessed=2 * B * D * itemsize + B * 4 + num_shards * 4)

    partials = pl.pallas_call(
        kernel,
        out_shape=jax.ShapeDtypeStruct((num_shards, 1, 1), jnp.float32),
        grid_spec=pltpu.PrefetchScalarGridSpec(
            num_scalar_prefetch=0,
            grid=(num_shards, tiles_per_shard),
            in_specs=[
                pl.BlockSpec((tb, D), data_map, **spec_kwargs),   # output1 (native dtype)
                pl.BlockSpec((tb, D), data_map, **spec_kwargs),   # output2 (native dtype)
                pl.BlockSpec((tb, 1), data_map, **spec_kwargs),   # label column
            ],
            out_specs=pl.BlockSpec((1, 1, 1), lambda c, i: (c, 0, 0)),
            scratch_shapes=[pltpu.VMEM((tb, 1), jnp.float32)],    # per-row accumulator
        ),
        compiler_params=pltpu.CompilerParams(
            # "parallel" on the shard axis is the documented megacore sharding
            # mechanism (one partial per TensorCore on multi-TC chips).
            dimension_semantics=("parallel", "arbitrary"),
            vmem_limit_bytes=vmem_limit),
        cost_estimate=cost,
    )(output1, output2, label2d)

    # torch.mean over the batch: sum of per-shard partial sums / B.
    return jnp.sum(partials) / jnp.float32(B)


def _reference_loss(output1, output2, label, margin=2.0):
    # Pure-JAX reference mirroring the PyTorch forward.
    diff = output1.astype(jnp.float32) - output2.astype(jnp.float32) + _PAIRWISE_EPS
    dist = jnp.sqrt(jnp.sum(diff * diff, axis=1))
    return jnp.mean(
        (1.0 - label) * dist ** 2 + label * jnp.maximum(margin - dist, 0.0) ** 2
    )


if __name__ == "__main__":
    keys = jax.random.split(jax.random.PRNGKey(0), 9)

    # Case 1: f32 embeddings, tiny siamese batch -> single full-extent tile.
    B, D = 8, 32
    o1 = jax.random.normal(keys[0], (B, D), dtype=jnp.float32)
    o2 = jax.random.normal(keys[1], (B, D), dtype=jnp.float32)
    lab = jax.random.bernoulli(keys[2], 0.5, (B,)).astype(jnp.float32)
    loss = contrastive_loss(o1, o2, lab, margin=2.0)
    jax.block_until_ready(loss)
    ref = _reference_loss(o1, o2, lab, margin=2.0)
    assert jnp.allclose(loss, ref, rtol=1e-5, atol=1e-6), (loss, ref)

    # Case 2: bf16 embeddings (native-dtype DMA), B not a multiple of the tile
    # -> multi-tile path with a partial, masked last tile.
    B2, D2 = 24, 32
    o1b = jax.random.normal(keys[3], (B2, D2), dtype=jnp.float32).astype(jnp.bfloat16)
    o2b = jax.random.normal(keys[4], (B2, D2), dtype=jnp.float32).astype(jnp.bfloat16)
    lab2 = jax.random.bernoulli(keys[5], 0.5, (B2,)).astype(jnp.float32)
    loss2 = contrastive_loss(o1b, o2b, lab2, margin=2.0, block_rows=16)
    jax.block_until_ready(loss2)
    ref2 = _reference_loss(o1b, o2b, lab2, margin=2.0)
    assert jnp.allclose(loss2, ref2, rtol=1e-4, atol=1e-4), (loss2, ref2)

    # Case 3: many small tiles -> exercises the deep-grid accumulation, the
    # triple-buffered pipeline, and (on multi-TC chips) the 2-shard split with
    # a clamped/masked duplicate trailing tile (9 tiles, odd).
    B3, D3 = 72, 32
    o1c = jax.random.normal(keys[6], (B3, D3), dtype=jnp.float32)
    o2c = jax.random.normal(keys[7], (B3, D3), dtype=jnp.float32)
    lab3 = jax.random.bernoulli(keys[8], 0.5, (B3,)).astype(jnp.float32)
    loss3 = contrastive_loss(o1c, o2c, lab3, margin=2.0, block_rows=8)
    jax.block_until_ready(loss3)
    ref3 = _reference_loss(o1c, o2c, lab3, margin=2.0)
    assert jnp.allclose(loss3, ref3, rtol=1e-5, atol=1e-6), (loss3, ref3)

    print("KERNEL_OK")
</pallas_src>

<mosaic_0001>
module attributes {stable_mosaic.version = 11 : i64} {
  func.func @_contrastive_loss_kernel(%arg0: i32, %arg1: i32, %arg2: memref<8x32xf32, #tpu.memory_space<vmem>>, %arg3: memref<8x32xf32, #tpu.memory_space<vmem>>, %arg4: memref<8x1xf32, #tpu.memory_space<vmem>>, %arg5: memref<1x1x1xf32, #tpu.memory_space<vmem>>, %arg6: memref<8x1xf32, #tpu.memory_space<vmem>>) attributes {dimension_semantics = [#tpu.dimension_semantics<parallel>, #tpu.dimension_semantics<arbitrary>], iteration_bounds = array<i64: 1, 1>, scalar_prefetch = 0 : i64, scratch_operands = 1 : i64, tpu.core_type = #tpu.core_type<tc>, window_params = [{transform_indices = @transform_0, window_bounds = array<i64: 8, 32>}, {transform_indices = @transform_1, window_bounds = array<i64: 8, 32>}, {transform_indices = @transform_2, window_bounds = array<i64: 8, 1>}, {transform_indices = @transform_3, window_bounds = array<i64: 1, 1, 1>}]} {
    %c0_i32 = arith.constant 0 : i32
    %0 = arith.cmpi eq, %arg1, %c0_i32 : i32
    %1 = arith.extui %0 : i1 to i32
    %c0_i32_0 = arith.constant 0 : i32
    %2 = arith.cmpi ne, %1, %c0_i32_0 : i32
    scf.if %2 {
      %cst_16 = arith.constant 0.000000e+00 : f32
      %36 = vector.broadcast %cst_16 : f32 to vector<8x1xf32>
      %c0_17 = arith.constant 0 : index
      %c0_18 = arith.constant 0 : index
      %37 = vector.load %arg6[%c0_17, %c0_18] : memref<8x1xf32, #tpu.memory_space<vmem>>, vector<8x1xf32>
      tpu.vector_store %arg6[%c0_17, %c0_18], %36 {strides = array<i32>} : memref<8x1xf32, #tpu.memory_space<vmem>>, vector<8x1xf32>,
    } else {
    }
    %c0 = arith.constant 0 : index
    %c0_1 = arith.constant 0 : index
    %3 = vector.load %arg2[%c0, %c0_1] : memref<8x32xf32, #tpu.memory_space<vmem>>, vector<8x32xf32>
    %c0_2 = arith.constant 0 : index
    %c0_3 = arith.constant 0 : index
    %4 = vector.load %arg3[%c0_2, %c0_3] : memref<8x32xf32, #tpu.memory_space<vmem>>, vector<8x32xf32>
    %c0_4 = arith.constant 0 : index
    %c0_5 = arith.constant 0 : index
    %5 = vector.load %arg4[%c0_4, %c0_5] : memref<8x1xf32, #tpu.memory_space<vmem>>, vector<8x1xf32>
    %6 = arith.subf %3, %4 : vector<8x32xf32>
    %cst = arith.constant 9.99999997E-7 : f32
    %7 = vector.broadcast %cst : f32 to vector<8x32xf32>
    %8 = arith.addf %6, %7 : vector<8x32xf32>
    %9 = arith.mulf %8, %8 : vector<8x32xf32>
    %cst_6 = arith.constant dense<0.000000e+00> : vector<8xf32>
    %10 = vector.multi_reduction <add>, %9, %cst_6 [1] : vector<8x32xf32> to vector<8xf32>
    %11 = vector.shape_cast %10 : vector<8xf32> to vector<8x1xf32>
    %12 = math.sqrt %11 : vector<8x1xf32>
    %cst_7 = arith.constant 1.000000e+00 : f32
    %13 = vector.broadcast %cst_7 : f32 to vector<8x1xf32>
    %14 = arith.subf %13, %5 : vector<8x1xf32>
    %15 = arith.mulf %14, %11 : vector<8x1xf32>
    %cst_8 = arith.constant 2.000000e+00 : f32
    %16 = vector.broadcast %cst_8 : f32 to vector<8x1xf32>
    %17 = arith.subf %16, %12 : vector<8x1xf32>
    %cst_9 = arith.constant 0.000000e+00 : f32
    %18 = vector.broadcast %cst_9 : f32 to vector<8x1xf32>
    %19 = arith.maximumf %17, %18 : vector<8x1xf32>
    %20 = arith.mulf %19, %19 : vector<8x1xf32>
    %21 = arith.mulf %5, %20 : vector<8x1xf32>
    %22 = arith.addf %15, %21 : vector<8x1xf32>
    %c1_i32 = arith.constant 1 : i32
    %23 = arith.muli %arg0, %c1_i32 : i32
    %24 = arith.addi %23, %arg1 : i32
    %c1_i32_10 = arith.constant 1 : i32
    %25 = arith.addi %24, %c1_i32_10 : i32
    %c8_i32 = arith.constant 8 : i32
    %26 = arith.muli %25, %c8_i32 : i32
    %c8_i32_11 = arith.constant 8 : i32
    %27 = arith.cmpi sgt, %26, %c8_i32_11 : i32
    %28 = arith.extui %27 : i1 to i32
    %c0_i32_12 = arith.constant 0 : i32
    %29 = arith.cmpi ne, %28, %c0_i32_12 : i32
    scf.if %29 {
      %c8_i32_16 = arith.constant 8 : i32
      %36 = arith.muli %24, %c8_i32_16 : i32
      %37 = tpu.iota {dimensions = array<i32: 0>} : vector<8x1xi32>
      %38 = vector.broadcast %36 : i32 to vector<8x1xi32>
      %39 = arith.addi %38, %37 : vector<8x1xi32>
      %c0_17 = arith.constant 0 : index
      %c0_18 = arith.constant 0 : index
      %40 = vector.load %arg6[%c0_17, %c0_18] : memref<8x1xf32, #tpu.memory_space<vmem>>, vector<8x1xf32>
      %c8_i32_19 = arith.constant 8 : i32
      %41 = vector.broadcast %c8_i32_19 : i32 to vector<8x1xi32>
      %42 = arith.cmpi slt, %39, %41 : vector<8x1xi32>
      %cst_20 = arith.constant 0.000000e+00 : f32
      %43 = vector.broadcast %cst_20 : f32 to vector<8x1xf32>
      %44 = arith.select %42, %22, %43 : vector<8x1xi1>, vector<8x1xf32>
      %45 = arith.addf %40, %44 : vector<8x1xf32>
      %c0_21 = arith.constant 0 : index
      %c0_22 = arith.constant 0 : index
      %46 = vector.load %arg6[%c0_21, %c0_22] : memref<8x1xf32, #tpu.memory_space<vmem>>, vector<8x1xf32>
      tpu.vector_store %arg6[%c0_21, %c0_22], %45 {strides = array<i32>} : memref<8x1xf32, #tpu.memory_space<vmem>>, vector<8x1xf32>,
    } else {
    }
    %true = arith.constant true
    %30 = arith.xori %27, %true : i1
    %31 = arith.extui %30 : i1 to i32
    %c0_i32_13 = arith.constant 0 : i32
    %32 = arith.cmpi ne, %31, %c0_i32_13 : i32
    scf.if %32 {
      %c0_16 = arith.constant 0 : index
      %c0_17 = arith.constant 0 : index
      %36 = vector.load %arg6[%c0_16, %c0_17] : memref<8x1xf32, #tpu.memory_space<vmem>>, vector<8x1xf32>
      %37 = arith.addf %36, %22 : vector<8x1xf32>
      %c0_18 = arith.constant 0 : index
      %c0_19 = arith.constant 0 : index
      %38 = vector.load %arg6[%c0_18, %c0_19] : memref<8x1xf32, #tpu.memory_space<vmem>>, vector<8x1xf32>
      tpu.vector_store %arg6[%c0_18, %c0_19], %37 {strides = array<i32>} : memref<8x1xf32, #tpu.memory_space<vmem>>, vector<8x1xf32>,
    } else {
    }
    %c0_i32_14 = arith.constant 0 : i32
    %33 = arith.cmpi eq, %arg1, %c0_i32_14 : i32
    %34 = arith.extui %33 : i1 to i32
    %c0_i32_15 = arith.constant 0 : i32
    %35 = arith.cmpi ne, %34, %c0_i32_15 : i32
    scf.if %35 {
      %cst_16 = arith.constant 0.000000e+00 : f32
      %36 = vector.broadcast %cst_16 : f32 to vector<1x1x1xf32>
      %c0_17 = arith.constant 0 : index
      %c0_18 = arith.constant 0 : index
      %37 = vector.load %arg6[%c0_17, %c0_18] : memref<8x1xf32, #tpu.memory_space<vmem>>, vector<8x1xf32>
      %38 = vector.shape_cast %37 : vector<8x1xf32> to vector<1x8x1xf32>
      %cst_19 = arith.constant dense<0.000000e+00> : vector<1xf32>
      %39 = vector.multi_reduction <add>, %38, %cst_19 [1, 2] : vector<1x8x1xf32> to vector<1xf32>
      %40 = vector.shape_cast %39 : vector<1xf32> to vector<1x1x1xf32>
      %41 = vector.extract %40[0, 0, 0] : f32 from vector<1x1x1xf32>
      %42 = vector.broadcast %41 : f32 to vector<1x1x1xf32>
      %43 = arith.addf %36, %42 : vector<1x1x1xf32>
      %c0_20 = arith.constant 0 : index
      %c0_21 = arith.constant 0 : index
      %c0_22 = arith.constant 0 : index
      %44 = vector.load %arg5[%c0_20, %c0_21, %c0_22] : memref<1x1x1xf32, #tpu.memory_space<vmem>>, vector<1x1x1xf32>
      tpu.vector_store %arg5[%c0_20, %c0_21, %c0_22], %43 {strides = array<i32>} : memref<1x1x1xf32, #tpu.memory_space<vmem>>, vector<1x1x1xf32>,
    } else {
    }
    return
  }
  func.func @transform_0(%arg0: i32, %arg1: i32) -> (i32, i32) {
    %c1_i32 = arith.constant 1 : i32
    %0 = arith.muli %arg0, %c1_i32 : i32
    %1 = arith.addi %0, %arg1 : i32
    %c0_i32 = arith.constant 0 : i32
    %2 = arith.minsi %1, %c0_i32 : i32
    %c0_i32_0 = arith.constant 0 : i32
    %c0_i32_1 = arith.constant 0 : i32
    return %2, %c0_i32_0 : i32, i32
  }
  func.func @transform_1(%arg0: i32, %arg1: i32) -> (i32, i32) {
    %c1_i32 = arith.constant 1 : i32
    %0 = arith.muli %arg0, %c1_i32 : i32
    %1 = arith.addi %0, %arg1 : i32
    %c0_i32 = arith.constant 0 : i32
    %2 = arith.minsi %1, %c0_i32 : i32
    %c0_i32_0 = arith.constant 0 : i32
    %c0_i32_1 = arith.constant 0 : i32
    return %2, %c0_i32_0 : i32, i32
  }
  func.func @transform_2(%arg0: i32, %arg1: i32) -> (i32, i32) {
    %c1_i32 = arith.constant 1 : i32
    %0 = arith.muli %arg0, %c1_i32 : i32
    %1 = arith.addi %0, %arg1 : i32
    %c0_i32 = arith.constant 0 : i32
    %2 = arith.minsi %1, %c0_i32 : i32
    %c0_i32_0 = arith.constant 0 : i32
    %c0_i32_1 = arith.constant 0 : i32
    return %2, %c0_i32_0 : i32, i32
  }
  func.func @transform_3(%arg0: i32, %arg1: i32) -> (i32, i32, i32) {
    %c0_i32 = arith.constant 0 : i32
    %c0_i32_0 = arith.constant 0 : i32
    %c0_i32_1 = arith.constant 0 : i32
    return %arg0, %c0_i32, %c0_i32_0 : i32, i32, i32
  }
}

</mosaic_0001>

<bundles_post_ra>
// kernel: tpu_custom_call.1
= control target key start
LH: loop header
LB: loop body
LE: loop exit
PB: predicated region body
PF: predicated region fallthrough
CT: control target
= control target key end

     0   :  { %8 = vsyncpa [#allocation4], 0  ;;  %s304_s0 = inlined_call_operand.vmem [shape: f32[8,32], index: 0, kind: input, shape index: {}]   ;;  %s305_s1 = inlined_call_operand.hbm [shape: f32[8,32], index: 1, kind: input, shape index: {}]   ;;  %s306_s2 = inlined_call_operand.vmem [shape: f32[8,1], index: 2, kind: input, shape index: {}]   ;;  %s307_s3 = inlined_call_operand.hbm [shape: f32[1,1,1], index: 3, kind: output, shape index: {}]  }
   0x1   :  { %9 = vsyncpa [#allocation5], 0  ;;  %s248_s12 = smov [#allocation3]   ;;  %s200_s16 = scalar_lea.hbm %s305_s1, 128 }
   0x2   :  { %s33_s13 = sshll.u32 %s248_s12, 4  ;;  %p201_p0 = scmp.ne.s32.totalorder %s305_s1, %s200_s16  ;;  %s34_s13 = int_to_ptr.vmem [resolvable:$true] %s33_s13 }
   0x3   :  { %p204_p1 = scmp.lt.u32.totalorder %s200_s16, %s305_s1 }
   0x5   :  { %p206_p2 = pnand %p204_p1, %p201_p0 }
   0x7   :  { %209 = shalt.err (!%p206_p2)
}
   0x8   :  { %s210_s21 = scalar_lea.vmem %s34_s13, 128  ;;  %p215_p4 = scmp.lt.s32.totalorder %s34_s13, %s34_s13 }
   0x9   :  { %p211_p3 = scmp.ne.s32.totalorder %s34_s13, %s210_s21  ;;  %p216_p5 = scmp.lt.s32.totalorder %s210_s21, %s210_s21 }
   0xb   :  { %p217_p6 = por %p216_p5, %p215_p4 }
   0xd   :  { %p218_p7 = pnand %p217_p6, %p211_p3 }
   0xf   :  { %221 = shalt.err (!%p218_p7)
}
  0x10   :  { %36 = dma.hbm_to_vmem [thread:$0]  %s305_s1, 128, %s34_s13, [#allocation4]  }
  0x11   :  { %244 = dma.done.wait [#allocation4], 128  }
  0x12   :  { %245 = vsyncadd [#allocation4], 4294967168  ;;  %v95_v0 = vld [vmem:[%s304_s0] sm:$0xff]  ;;  %v96_v1 = vld [vmem:[#allocation3] sm:$0xff]  ;;  %vm101_vm0 = vcmask 261120   ;;  %vm93_vm1 = vcmask 7168  }
  0x13   :  { %v98_v2 = vsub.f32 %v95_v0, %v96_v1  ;;  %v249_v6 = vmov 0.0   ;;  %v97_v12 = vld [vmem:[%s306_s2] sm:$0xff]  ;;  %s250_s2 = smov [#allocation6]   ;;  %vm162_vm4 = vcmask 0  }
  0x14   :  { %94 = vst.msk [vmem:[#allocation2] sm:$0xff] %vm93_vm1, %v249_v6  ;;  %v112_v15 = vsub.f32 1.0, %v97_v12  ;;  %s170_s26 = sshll.u32 %s250_s2, 4  ;;  %s171_s26 = int_to_ptr.vmem [resolvable:$true] %s170_s26 }
  0x15   :  { %v99_v3 = vadd.f32 1e-06, %v98_v2  ;;  %s222_s28 = scalar_lea.vmem %s171_s26, 16  ;;  %s226_s29 = scalar_lea.vmem %s171_s26, 32 }
  0x16   :  { %p223_p8 = scmp.ne.s32.totalorder %s171_s26, %s222_s28  ;;  %p227_p9 = scmp.lt.s32.totalorder %s171_s26, %s171_s26 }
  0x17   :  { %v100_v4 = vmul.f32 %v99_v3, %v99_v3  ;;  %p228_p10 = scmp.lt.s32.totalorder %s226_s29, %s222_s28 }
  0x19   :  { %v102_v5 = vsel %vm101_vm0, %v100_v4, 0.0  ;;  %p229_p11 = por %p228_p10, %p227_p9 }
  0x1a   :  { %103 = vadd.xlane.f32.xlu0 %v102_v5 }
  0x1b   :  { %v141_v20 = vld [vmem:[#allocation2] sm:$0xff]  ;;  %p230_p12 = pnand %p229_p11, %p223_p8 }
  0xa7   :  { %v104_v7 = vpop.xlane.xlu0 %103 }
  0xa8   :  { %198 = vrsqrt.f32 %v104_v7  ;;  %vm107_vm2 = vcmp.eq.f32.partialorder %v104_v7, inf  ;;  %v110_v10 = vand.u32 2147483648, %v104_v7  ;;  %vm109_vm3 = vcmp.eq.f32.partialorder %v104_v7, 0.0 }
  0xa9   :  { %v113_v18 = vmul.f32 %v112_v15, %v104_v7 }
  0xb2   :  { %v199_v8 = vpop.eup %198 }
  0xb3   :  { %v106_v9 = vmul.f32 %v199_v8, %v104_v7 }
  0xb5   :  { %v108_v11 = vsel %vm107_vm2, %v104_v7, %v106_v9 }
  0xb6   :  { %v111_v13 = vsel %vm109_vm3, %v110_v10, %v108_v11 }
  0xb7   :  { %v114_v14 = vsub.f32 2.0, %v111_v13 }
  0xb9   :  { %v115_v16 = vmax.f32 %v114_v14, 0.0 }
  0xbb   :  { %v116_v17 = vmul.f32 %v115_v16, %v115_v16 }
  0xbd   :  { %v117_v19 = vmul.f32 %v116_v17, %v97_v12 }
  0xbf   :  { %v118_v21 = vadd.f32 %v117_v19, %v113_v18 }
  0xc1   :  { %v142_v22 = vadd.f32 %v141_v20, %v118_v21 }
  0xc3   :  { %144 = vst.msk [vmem:[#allocation2] sm:$0xff] %vm93_vm1, %v142_v22 }
  0xca   :  { %v148_v23 = vld [vmem:[#allocation2] sm:$0xff] }
  0xcb   :  { %v150_v24 = vsel %vm93_vm1, %v148_v23, 0.0 }
  0xcc   :  { %151 = vadd.xlane.f32.xlu0 %v150_v24 }
 0x159   :  { %v152_v25 = vpop.xlane.xlu0 %151 }
 0x15a   :  { %v153_v26 = vrot.slane %v152_v25, 4 }
 0x15c   :  { %v154_v27 = vadd.f32 %v153_v26, %v152_v25 }
 0x15e   :  { %v155_v28 = vrot.slane %v154_v27, 2 }
 0x160   :  { %v156_v29 = vadd.f32 %v155_v28, %v154_v27 }
 0x162   :  { %v157_v30 = vrot.slane %v156_v29, 1 }
 0x164   :  { %v158_v31 = vadd.f32 %v157_v30, %v156_v29 }
 0x166   :  { %193 = vpush %v158_v31 }
 0x197   :  { %s194_s27 = spop %193 }
 0x198   :  { %v160_v32 = vstv %s194_s27 }
 0x199   :  { %163 = vst.msk [vmem:[#allocation6] sm:$0x1] %vm162_vm4, %v160_v32 }
 0x19a   :  { %233 = shalt.err (!%p230_p12)
}
 0x19b   :  { %s234_s5 = scalar_lea.hbm %s307_s3, 16 }
 0x19c   :  { %p235_p13 = scmp.ne.s32.totalorder %s307_s3, %s234_s5  ;;  %p238_p0 = scmp.lt.u32.totalorder %s234_s5, %s307_s3 }
 0x19e   :  { %p240_p1 = pnand %p238_p0, %p235_p13 }
 0x1a0   :  { %243 = shalt.err (!%p240_p1)
}
 0x1a1   :  { %173 = dma.vmem_to_hbm [thread:$0]  %s171_s26, 16, %s307_s3, [#allocation5]  }
 0x1a2   :  { %246 = dma.done.wait [#allocation5], 16  }
 0x1a3   :  { %247 = vsyncadd [#allocation5], 4294967280 }
 0x1a4   :  { %177 = vsyncpa [#allocation4], 1 }
 0x1a5   :  { %178 = vsyncpa [#allocation5], 1 }

</bundles_post_ra>
